<compile_context>
chip_gen: v6e
topology: v6e:2x2x1
jax: 0.10.0
libtpu: 0.0.40
codegen_flags: <defaults>
</compile_context>

<pallas_src>
import functools

import jax
import jax.numpy as jnp
from jax import lax
from jax.experimental import pallas as pl
from jax.experimental.pallas import tpu as pltpu


def _mmd_kernel(x_ref, y_ref, o_ref,
                nib_ref, sqx_ref, sqy_ref, xx_ref, xy_ref, yy_ref, *,
                n, m, tmx, tmy, sx, sy, n_kernels, mul_factor, bandwidth):
    f32 = jnp.float32
    s = pl.program_id(0)
    steps = sx + sy
    n_pad = sx * tmx
    m_pad = sy * tmy
    N = n + m

    # Static RBF bandwidth multipliers: mul_factor ** (k - n_kernels // 2).
    mults = [float(mul_factor) ** (k - n_kernels // 2) for k in range(n_kernels)]
    max_mult = max(mults)
    pow2_chain = (float(mul_factor) == 2.0)   # repeated squaring is exact here

    def rbf_block_sum(l2, nib, mask):
        """(1,1) sum over a block of sum_k exp(-L2/(bw*mult_k)); nib = -1/bw."""
        if pow2_chain:
            # Widest kernel via a single EUP exp (scale folded into the scalar),
            # narrower kernels by repeated squaring on the VALU.  Accumulate
            # elementwise, reduce once (single XLU reduction per block).
            p = jnp.exp(l2 * (nib * (1.0 / max_mult)))
            if mask is not None:
                p = p * mask                      # 0 stays 0 under squaring
            ksum = p
            for _ in range(n_kernels - 1):
                p = p * p
                ksum = ksum + p
        else:
            scaled = l2 * nib
            ksum = None
            for mult in mults:
                e = jnp.exp(scaled * (1.0 / mult))
                ksum = e if ksum is None else ksum + e
            if mask is not None:
                ksum = ksum * mask
        return jnp.sum(ksum, keepdims=True)

    # ---- step 0: bandwidth, column squared norms, accumulator init ----------
    @pl.when(s == 0)
    def _():
        x_f = x_ref[...].astype(f32)
        y_f = y_ref[...].astype(f32)
        sqx = jnp.sum(x_f * x_f, axis=-1, keepdims=True)       # (n_pad, 1)
        sqy = jnp.sum(y_f * y_f, axis=-1, keepdims=True)       # (m_pad, 1)
        sqx_ref[...] = sqx.T                                    # (1, n_pad)
        sqy_ref[...] = sqy.T                                    # (1, m_pad)
        if bandwidth is None:
            # sum_{ij} ||z_i - z_j||^2 = 2*N*sum||z||^2 - 2*||sum z||^2
            # (zero-padded rows drop out of both terms).
            sum_sq = jnp.sum(sqx, keepdims=True) + jnp.sum(sqy, keepdims=True)
            col = (jnp.sum(x_f, axis=0, keepdims=True)
                   + jnp.sum(y_f, axis=0, keepdims=True))       # (1, d)
            tot = 2.0 * N * sum_sq - 2.0 * jnp.sum(col * col, keepdims=True)
            bw = jnp.maximum(tot, 0.0) * (1.0 / float(N * N - N))
            nib_ref[...] = -pl.reciprocal(bw)                   # -1 / bandwidth
        else:
            nib_ref[...] = jnp.full((1, 1), -1.0 / float(bandwidth), f32)
        zero = jnp.zeros((1, 1), f32)
        xx_ref[...] = zero
        xy_ref[...] = zero
        yy_ref[...] = zero

    # ---- steps [0, sx): one strip of X rows -> XX and XY contributions ------
    @pl.when(s < sx)
    def _():
        r0 = pl.multiple_of(s * tmx, tmx)
        xs = x_ref[pl.ds(r0, tmx), :]                           # (tmx, d), input dtype
        xs_f = xs.astype(f32)
        sq_rows = jnp.sum(xs_f * xs_f, axis=-1, keepdims=True)  # (tmx, 1)
        nib = nib_ref[...]                                      # (1, 1)

        # -- XX block strip --
        gram = lax.dot_general(xs, x_ref[...], (((1,), (1,)), ((), ())),
                               preferred_element_type=f32)      # (tmx, n_pad)
        l2 = jnp.maximum(sq_rows + sqx_ref[...] - 2.0 * gram, 0.0)
        rid = lax.broadcasted_iota(jnp.int32, (tmx, n_pad), 0) + s * tmx
        cid = lax.broadcasted_iota(jnp.int32, (tmx, n_pad), 1)
        l2 = jnp.where(rid == cid, 0.0, l2)                     # exact-zero diagonal
        mask = ((rid < n) & (cid < n)).astype(f32) if n_pad != n else None
        xx_ref[...] = xx_ref[...] + rbf_block_sum(l2, nib, mask)

        # -- XY block strip --
        gram_xy = lax.dot_general(xs, y_ref[...], (((1,), (1,)), ((), ())),
                                  preferred_element_type=f32)   # (tmx, m_pad)
        l2xy = jnp.maximum(sq_rows + sqy_ref[...] - 2.0 * gram_xy, 0.0)
        if n_pad != n or m_pad != m:
            rid2 = lax.broadcasted_iota(jnp.int32, (tmx, m_pad), 0) + s * tmx
            cid2 = lax.broadcasted_iota(jnp.int32, (tmx, m_pad), 1)
            mask_xy = ((rid2 < n) & (cid2 < m)).astype(f32)
        else:
            mask_xy = None
        xy_ref[...] = xy_ref[...] + rbf_block_sum(l2xy, nib, mask_xy)

    # ---- steps [sx, sx+sy): one strip of Y rows -> YY contributions ---------
    @pl.when(s >= sx)
    def _():
        t = s - sx
        r0 = pl.multiple_of(t * tmy, tmy)
        ys = y_ref[pl.ds(r0, tmy), :]                           # (tmy, d)
        ys_f = ys.astype(f32)
        sq_rows = jnp.sum(ys_f * ys_f, axis=-1, keepdims=True)  # (tmy, 1)
        nib = nib_ref[...]

        gram = lax.dot_general(ys, y_ref[...], (((1,), (1,)), ((), ())),
                               preferred_element_type=f32)      # (tmy, m_pad)
        l2 = jnp.maximum(sq_rows + sqy_ref[...] - 2.0 * gram, 0.0)
        rid = lax.broadcasted_iota(jnp.int32, (tmy, m_pad), 0) + t * tmy
        cid = lax.broadcasted_iota(jnp.int32, (tmy, m_pad), 1)
        l2 = jnp.where(rid == cid, 0.0, l2)
        mask = ((rid < m) & (cid < m)).astype(f32) if m_pad != m else None
        yy_ref[...] = yy_ref[...] + rbf_block_sum(l2, nib, mask)

    # ---- last step: combine block means into the scalar loss ----------------
    @pl.when(s == steps - 1)
    def _():
        loss = (xx_ref[...] * (1.0 / float(n * n))
                - 2.0 * xy_ref[...] * (1.0 / float(n * m))
                + yy_ref[...] * (1.0 / float(m * m)))
        o_ref[...] = loss.astype(o_ref.dtype)


def mmd_loss(x, y, n_kernels=5, mul_factor=2.0, bandwidth=None, block_rows=256):
    """MMD loss with multi-bandwidth RBF kernel; matches MMDLoss(RBF()) forward."""
    n, d = x.shape
    m, d2 = y.shape
    assert d == d2, "X and Y must share the feature dimension"

    def _round_up(a, b):
        return -(-a // b) * b

    # Row-strip size per operand: multiple of 8 sublanes, capped at block_rows.
    # block_rows trades per-strip VMEM (~3 live f32 (TM, max(n, m)) temps plus
    # the resident inputs) against per-step overhead; 256 is comfortable on
    # v5e/v6e (128 MiB VMEM), use <=128 on v7x (64 MiB) for very large n/m.
    tmx = max(8, min(block_rows, _round_up(n, 8)))
    tmy = max(8, min(block_rows, _round_up(m, 8)))
    n_pad = _round_up(n, tmx)
    m_pad = _round_up(m, tmy)
    if n_pad != n:
        x = jnp.pad(x, ((0, n_pad - n), (0, 0)))
    if m_pad != m:
        y = jnp.pad(y, ((0, m_pad - m), (0, 0)))
    sx = n_pad // tmx
    sy = m_pad // tmy

    kernel = functools.partial(
        _mmd_kernel, n=n, m=m, tmx=tmx, tmy=tmy, sx=sx, sy=sy,
        n_kernels=int(n_kernels), mul_factor=float(mul_factor),
        bandwidth=bandwidth)

    out = pl.pallas_call(
        kernel,
        out_shape=jax.ShapeDtypeStruct((1, 1), jnp.float32),
        grid=(sx + sy,),
        in_specs=[
            pl.BlockSpec((n_pad, d), lambda s: (0, 0)),   # X resident (fetched once)
            pl.BlockSpec((m_pad, d), lambda s: (0, 0)),   # Y resident (fetched once)
        ],
        out_specs=pl.BlockSpec((1, 1), lambda s: (0, 0)),
        scratch_shapes=[
            pltpu.VMEM((1, 1), jnp.float32),       # -1 / bandwidth
            pltpu.VMEM((1, n_pad), jnp.float32),   # column ||x||^2
            pltpu.VMEM((1, m_pad), jnp.float32),   # column ||y||^2
            pltpu.VMEM((1, 1), jnp.float32),       # sum K_xx
            pltpu.VMEM((1, 1), jnp.float32),       # sum K_xy
            pltpu.VMEM((1, 1), jnp.float32),       # sum K_yy
        ],
        compiler_params=pltpu.CompilerParams(
            dimension_semantics=("arbitrary",),    # sequential reduction over strips
            vmem_limit_bytes=48 * 1024 * 1024),
    )(x, y)
    return out[0, 0]


def _mmd_ref(x, y, n_kernels=5, mul_factor=2.0):
    """Pure-JAX reference mirroring the PyTorch MMDLoss/RBF semantics."""
    z = jnp.vstack([x, y]).astype(jnp.float32)
    d2 = jnp.sum((z[:, None, :] - z[None, :, :]) ** 2, axis=-1)
    N = z.shape[0]
    bw = d2.sum() / (N * N - N)
    mults = float(mul_factor) ** (jnp.arange(n_kernels) - n_kernels // 2)
    K = jnp.exp(-d2[None, ...] / (bw * mults[:, None, None])).sum(0)
    n = x.shape[0]
    return K[:n, :n].mean() - 2.0 * K[:n, n:].mean() + K[n:, n:].mean()


if __name__ == "__main__":
    key = jax.random.PRNGKey(0)
    k1, k2, k3, k4, k5, k6 = jax.random.split(key, 6)

    # Small shapes consistent with the module: n = m = 8 samples, hidden = 32.
    X = jax.random.normal(k1, (8, 32), dtype=jnp.float32)
    Y = jax.random.normal(k2, (8, 32), dtype=jnp.float32) + 0.5

    loss = mmd_loss(X, Y)
    jax.block_until_ready(loss)
    ref = _mmd_ref(X, Y)
    assert jnp.allclose(loss, ref, rtol=2e-4, atol=3e-5), (loss, ref)

    # Ragged sample counts (exercises the zero-pad + mask path).
    X2 = jax.random.normal(k3, (11, 32), dtype=jnp.float32)
    Y2 = jax.random.normal(k4, (7, 32), dtype=jnp.float32) * 1.2 + 0.4
    loss2 = mmd_loss(X2, Y2)
    ref2 = _mmd_ref(X2, Y2)
    assert jnp.allclose(loss2, ref2, rtol=2e-4, atol=3e-5), (loss2, ref2)

    # Multiple row strips per operand (exercises strip accumulation).
    X3 = jax.random.normal(k5, (24, 32), dtype=jnp.float32)
    Y3 = jax.random.normal(k6, (16, 32), dtype=jnp.float32) + 0.3
    loss3 = mmd_loss(X3, Y3, block_rows=8)
    ref3 = _mmd_ref(X3, Y3)
    assert jnp.allclose(loss3, ref3, rtol=2e-4, atol=3e-5), (loss3, ref3)

    print("KERNEL_OK")
</pallas_src>

<mosaic_0001>
module attributes {stable_mosaic.version = 11 : i64} {
  func.func @_mmd_kernel(%arg0: i32, %arg1: memref<8x32xf32, #tpu.memory_space<vmem>>, %arg2: memref<8x32xf32, #tpu.memory_space<vmem>>, %arg3: memref<1x1xf32, #tpu.memory_space<vmem>>, %arg4: memref<1x1xf32, #tpu.memory_space<vmem>>, %arg5: memref<1x8xf32, #tpu.memory_space<vmem>>, %arg6: memref<1x8xf32, #tpu.memory_space<vmem>>, %arg7: memref<1x1xf32, #tpu.memory_space<vmem>>, %arg8: memref<1x1xf32, #tpu.memory_space<vmem>>, %arg9: memref<1x1xf32, #tpu.memory_space<vmem>>) attributes {dimension_semantics = [#tpu.dimension_semantics<arbitrary>], iteration_bounds = array<i64: 2>, scalar_prefetch = 0 : i64, scratch_operands = 6 : i64, tpu.core_type = #tpu.core_type<tc>, window_params = [{pipeline_mode = #tpu.pipeline_mode<synchronous>, transform_indices = @transform_0, window_bounds = array<i64: 8, 32>}, {pipeline_mode = #tpu.pipeline_mode<synchronous>, transform_indices = @transform_1, window_bounds = array<i64: 8, 32>}, {pipeline_mode = #tpu.pipeline_mode<synchronous>, transform_indices = @transform_2, window_bounds = array<i64: 1, 1>}]} {
    %c0_i32 = arith.constant 0 : i32
    %0 = arith.cmpi eq, %arg0, %c0_i32 : i32
    %1 = arith.extui %0 : i1 to i32
    %c0_i32_0 = arith.constant 0 : i32
    %2 = arith.cmpi ne, %1, %c0_i32_0 : i32
    scf.if %2 {
      %c0 = arith.constant 0 : index
      %c0_6 = arith.constant 0 : index
      %12 = vector.load %arg1[%c0, %c0_6] : memref<8x32xf32, #tpu.memory_space<vmem>>, vector<8x32xf32>
      %c0_7 = arith.constant 0 : index
      %c0_8 = arith.constant 0 : index
      %13 = vector.load %arg2[%c0_7, %c0_8] : memref<8x32xf32, #tpu.memory_space<vmem>>, vector<8x32xf32>
      %14 = arith.mulf %12, %12 : vector<8x32xf32>
      %cst = arith.constant dense<0.000000e+00> : vector<8xf32>
      %15 = vector.multi_reduction <add>, %14, %cst [1] : vector<8x32xf32> to vector<8xf32>
      %16 = vector.shape_cast %15 : vector<8xf32> to vector<8x1xf32>
      %17 = arith.mulf %13, %13 : vector<8x32xf32>
      %cst_9 = arith.constant dense<0.000000e+00> : vector<8xf32>
      %18 = vector.multi_reduction <add>, %17, %cst_9 [1] : vector<8x32xf32> to vector<8xf32>
      %19 = vector.shape_cast %18 : vector<8xf32> to vector<8x1xf32>
      %20 = tpu.transpose %16, [1, 0] : vector<8x1xf32> -> vector<1x8xf32>
      %c0_10 = arith.constant 0 : index
      %c0_11 = arith.constant 0 : index
      %21 = vector.load %arg5[%c0_10, %c0_11] : memref<1x8xf32, #tpu.memory_space<vmem>>, vector<1x8xf32>
      tpu.vector_store %arg5[%c0_10, %c0_11], %20 {strides = array<i32>} : memref<1x8xf32, #tpu.memory_space<vmem>>, vector<1x8xf32>,
      %22 = tpu.transpose %19, [1, 0] : vector<8x1xf32> -> vector<1x8xf32>
      %c0_12 = arith.constant 0 : index
      %c0_13 = arith.constant 0 : index
      %23 = vector.load %arg6[%c0_12, %c0_13] : memref<1x8xf32, #tpu.memory_space<vmem>>, vector<1x8xf32>
      tpu.vector_store %arg6[%c0_12, %c0_13], %22 {strides = array<i32>} : memref<1x8xf32, #tpu.memory_space<vmem>>, vector<1x8xf32>,
      %24 = vector.shape_cast %16 : vector<8x1xf32> to vector<1x8x1xf32>
      %cst_14 = arith.constant dense<0.000000e+00> : vector<1xf32>
      %25 = vector.multi_reduction <add>, %24, %cst_14 [1, 2] : vector<1x8x1xf32> to vector<1xf32>
      %26 = vector.shape_cast %25 : vector<1xf32> to vector<1x1x1xf32>
      %27 = vector.extract %26[0, 0, 0] : f32 from vector<1x1x1xf32>
      %28 = vector.broadcast %27 : f32 to vector<1x1xf32>
      %29 = vector.shape_cast %19 : vector<8x1xf32> to vector<1x8x1xf32>
      %cst_15 = arith.constant dense<0.000000e+00> : vector<1xf32>
      %30 = vector.multi_reduction <add>, %29, %cst_15 [1, 2] : vector<1x8x1xf32> to vector<1xf32>
      %31 = vector.shape_cast %30 : vector<1xf32> to vector<1x1x1xf32>
      %32 = vector.extract %31[0, 0, 0] : f32 from vector<1x1x1xf32>
      %33 = vector.broadcast %32 : f32 to vector<1x1xf32>
      %34 = arith.addf %28, %33 : vector<1x1xf32>
      %cst_16 = arith.constant dense<0.000000e+00> : vector<32xf32>
      %35 = vector.multi_reduction <add>, %12, %cst_16 [0] : vector<8x32xf32> to vector<32xf32>
      %36 = vector.shape_cast %35 : vector<32xf32> to vector<1x32xf32>
      %cst_17 = arith.constant dense<0.000000e+00> : vector<32xf32>
      %37 = vector.multi_reduction <add>, %13, %cst_17 [0] : vector<8x32xf32> to vector<32xf32>
      %38 = vector.shape_cast %37 : vector<32xf32> to vector<1x32xf32>
      %39 = arith.addf %36, %38 : vector<1x32xf32>
      %cst_18 = arith.constant 3.200000e+01 : f32
      %40 = vector.broadcast %cst_18 : f32 to vector<1x1xf32>
      %41 = arith.mulf %40, %34 : vector<1x1xf32>
      %42 = arith.mulf %39, %39 : vector<1x32xf32>
      %43 = vector.shape_cast %42 : vector<1x32xf32> to vector<1x1x32xf32>
      %cst_19 = arith.constant dense<0.000000e+00> : vector<1xf32>
      %44 = vector.multi_reduction <add>, %43, %cst_19 [1, 2] : vector<1x1x32xf32> to vector<1xf32>
      %45 = vector.shape_cast %44 : vector<1xf32> to vector<1x1x1xf32>
      %46 = vector.extract %45[0, 0, 0] : f32 from vector<1x1x1xf32>
      %47 = vector.broadcast %46 : f32 to vector<1x1xf32>
      %cst_20 = arith.constant 2.000000e+00 : f32
      %48 = vector.broadcast %cst_20 : f32 to vector<1x1xf32>
      %49 = arith.mulf %48, %47 : vector<1x1xf32>
      %50 = arith.subf %41, %49 : vector<1x1xf32>
      %cst_21 = arith.constant 0.000000e+00 : f32
      %51 = vector.broadcast %cst_21 : f32 to vector<1x1xf32>
      %52 = arith.maximumf %50, %51 : vector<1x1xf32>
      %cst_22 = arith.constant 0.00416666688 : f32
      %53 = vector.broadcast %cst_22 : f32 to vector<1x1xf32>
      %54 = arith.mulf %52, %53 : vector<1x1xf32>
      %55 = tpu.reciprocal %54 : vector<1x1xf32> -> vector<1x1xf32>
      %cst_23 = arith.constant 0.000000e+00 : f32
      %56 = vector.broadcast %cst_23 : f32 to vector<1x1xf32>
      %57 = arith.subf %56, %55 : vector<1x1xf32>
      %c0_24 = arith.constant 0 : index
      %c0_25 = arith.constant 0 : index
      %58 = vector.load %arg4[%c0_24, %c0_25] : memref<1x1xf32, #tpu.memory_space<vmem>>, vector<1x1xf32>
      tpu.vector_store %arg4[%c0_24, %c0_25], %57 {strides = array<i32>} : memref<1x1xf32, #tpu.memory_space<vmem>>, vector<1x1xf32>,
      %cst_26 = arith.constant 0.000000e+00 : f32
      %59 = vector.broadcast %cst_26 : f32 to vector<1x1xf32>
      %c0_27 = arith.constant 0 : index
      %c0_28 = arith.constant 0 : index
      %60 = vector.load %arg7[%c0_27, %c0_28] : memref<1x1xf32, #tpu.memory_space<vmem>>, vector<1x1xf32>
      tpu.vector_store %arg7[%c0_27, %c0_28], %59 {strides = array<i32>} : memref<1x1xf32, #tpu.memory_space<vmem>>, vector<1x1xf32>,
      %c0_29 = arith.constant 0 : index
      %c0_30 = arith.constant 0 : index
      %61 = vector.load %arg8[%c0_29, %c0_30] : memref<1x1xf32, #tpu.memory_space<vmem>>, vector<1x1xf32>
      tpu.vector_store %arg8[%c0_29, %c0_30], %59 {strides = array<i32>} : memref<1x1xf32, #tpu.memory_space<vmem>>, vector<1x1xf32>,
      %c0_31 = arith.constant 0 : index
      %c0_32 = arith.constant 0 : index
      %62 = vector.load %arg9[%c0_31, %c0_32] : memref<1x1xf32, #tpu.memory_space<vmem>>, vector<1x1xf32>
      tpu.vector_store %arg9[%c0_31, %c0_32], %59 {strides = array<i32>} : memref<1x1xf32, #tpu.memory_space<vmem>>, vector<1x1xf32>,
    } else {
    }
    %c1_i32 = arith.constant 1 : i32
    %3 = arith.cmpi slt, %arg0, %c1_i32 : i32
    %4 = arith.extui %3 : i1 to i32
    %c0_i32_1 = arith.constant 0 : i32
    %5 = arith.cmpi ne, %4, %c0_i32_1 : i32
    scf.if %5 {
      %c8_i32 = arith.constant 8 : i32
      %12 = arith.muli %arg0, %c8_i32 : i32
      %13 = tpu.assume_multiple %12, 8 : i32
      %14 = arith.index_cast %13 : i32 to index
      %c0 = arith.constant 0 : index
      %15 = vector.load %arg1[%14, %c0] : memref<8x32xf32, #tpu.memory_space<vmem>>, vector<8x32xf32>
      %16 = arith.mulf %15, %15 : vector<8x32xf32>
      %cst = arith.constant dense<0.000000e+00> : vector<8xf32>
      %17 = vector.multi_reduction <add>, %16, %cst [1] : vector<8x32xf32> to vector<8xf32>
      %18 = vector.shape_cast %17 : vector<8xf32> to vector<8x1xf32>
      %c0_6 = arith.constant 0 : index
      %c0_7 = arith.constant 0 : index
      %19 = vector.load %arg4[%c0_6, %c0_7] : memref<1x1xf32, #tpu.memory_space<vmem>>, vector<1x1xf32>
      %c0_8 = arith.constant 0 : index
      %c0_9 = arith.constant 0 : index
      %20 = vector.load %arg1[%c0_8, %c0_9] : memref<8x32xf32, #tpu.memory_space<vmem>>, vector<8x32xf32>
      %cst_10 = arith.constant dense<0.000000e+00> : vector<8x8xf32>
      %21 = tpu.matmul %15, %20, %cst_10 {dimension_numbers = #tpu.dot_dimension_numbers<[1], [1], [0], [0], [0, 0, 1, 0], [], []>} : vector<8x32xf32>, vector<8x32xf32>, vector<8x8xf32> -> vector<8x8xf32>
      %c0_11 = arith.constant 0 : index
      %c0_12 = arith.constant 0 : index
      %22 = vector.load %arg5[%c0_11, %c0_12] : memref<1x8xf32, #tpu.memory_space<vmem>>, vector<1x8xf32>
      %23 = vector.broadcast %18 : vector<8x1xf32> to vector<8x8xf32>
      %24 = vector.broadcast %22 : vector<1x8xf32> to vector<8x8xf32>
      %25 = arith.addf %23, %24 : vector<8x8xf32>
      %cst_13 = arith.constant 2.000000e+00 : f32
      %26 = vector.broadcast %cst_13 : f32 to vector<8x8xf32>
      %27 = arith.mulf %26, %21 : vector<8x8xf32>
      %28 = arith.subf %25, %27 : vector<8x8xf32>
      %cst_14 = arith.constant 0.000000e+00 : f32
      %29 = vector.broadcast %cst_14 : f32 to vector<8x8xf32>
      %30 = arith.maximumf %28, %29 : vector<8x8xf32>
      %31 = tpu.iota {dimensions = array<i32: 0>} : vector<8x8xi32>
      %c8_i32_15 = arith.constant 8 : i32
      %32 = arith.muli %arg0, %c8_i32_15 : i32
      %33 = vector.broadcast %32 : i32 to vector<8x8xi32>
      %34 = arith.addi %31, %33 : vector<8x8xi32>
      %35 = tpu.iota {dimensions = array<i32: 1>} : vector<8x8xi32>
      %36 = arith.cmpi eq, %34, %35 : vector<8x8xi32>
      %cst_16 = arith.constant 0.000000e+00 : f32
      %37 = vector.broadcast %cst_16 : f32 to vector<8x8xf32>
      %38 = arith.select %36, %37, %30 : vector<8x8xi1>, vector<8x8xf32>
      %c0_17 = arith.constant 0 : index
      %c0_18 = arith.constant 0 : index
      %39 = vector.load %arg7[%c0_17, %c0_18] : memref<1x1xf32, #tpu.memory_space<vmem>>, vector<1x1xf32>
      %cst_19 = arith.constant 2.500000e-01 : f32
      %40 = vector.broadcast %cst_19 : f32 to vector<1x1xf32>
      %41 = arith.mulf %19, %40 : vector<1x1xf32>
      %42 = vector.broadcast %41 : vector<1x1xf32> to vector<8x8xf32>
      %43 = arith.mulf %38, %42 : vector<8x8xf32>
      %44 = math.exp %43 : vector<8x8xf32>
      %45 = arith.mulf %44, %44 : vector<8x8xf32>
      %46 = arith.addf %44, %45 : vector<8x8xf32>
      %47 = arith.mulf %45, %45 : vector<8x8xf32>
      %48 = arith.addf %46, %47 : vector<8x8xf32>
      %49 = arith.mulf %47, %47 : vector<8x8xf32>
      %50 = arith.addf %48, %49 : vector<8x8xf32>
      %51 = arith.mulf %49, %49 : vector<8x8xf32>
      %52 = arith.addf %50, %51 : vector<8x8xf32>
      %53 = vector.shape_cast %52 : vector<8x8xf32> to vector<1x8x8xf32>
      %cst_20 = arith.constant dense<0.000000e+00> : vector<1xf32>
      %54 = vector.multi_reduction <add>, %53, %cst_20 [1, 2] : vector<1x8x8xf32> to vector<1xf32>
      %55 = vector.shape_cast %54 : vector<1xf32> to vector<1x1x1xf32>
      %56 = vector.extract %55[0, 0, 0] : f32 from vector<1x1x1xf32>
      %57 = vector.broadcast %56 : f32 to vector<1x1xf32>
      %58 = arith.addf %39, %57 : vector<1x1xf32>
      %c0_21 = arith.constant 0 : index
      %c0_22 = arith.constant 0 : index
      %59 = vector.load %arg7[%c0_21, %c0_22] : memref<1x1xf32, #tpu.memory_space<vmem>>, vector<1x1xf32>
      tpu.vector_store %arg7[%c0_21, %c0_22], %58 {strides = array<i32>} : memref<1x1xf32, #tpu.memory_space<vmem>>, vector<1x1xf32>,
      %c0_23 = arith.constant 0 : index
      %c0_24 = arith.constant 0 : index
      %60 = vector.load %arg2[%c0_23, %c0_24] : memref<8x32xf32, #tpu.memory_space<vmem>>, vector<8x32xf32>
      %cst_25 = arith.constant dense<0.000000e+00> : vector<8x8xf32>
      %61 = tpu.matmul %15, %60, %cst_25 {dimension_numbers = #tpu.dot_dimension_numbers<[1], [1], [0], [0], [0, 0, 1, 0], [], []>} : vector<8x32xf32>, vector<8x32xf32>, vector<8x8xf32> -> vector<8x8xf32>
      %c0_26 = arith.constant 0 : index
      %c0_27 = arith.constant 0 : index
      %62 = vector.load %arg6[%c0_26, %c0_27] : memref<1x8xf32, #tpu.memory_space<vmem>>, vector<1x8xf32>
      %63 = vector.broadcast %18 : vector<8x1xf32> to vector<8x8xf32>
      %64 = vector.broadcast %62 : vector<1x8xf32> to vector<8x8xf32>
      %65 = arith.addf %63, %64 : vector<8x8xf32>
      %cst_28 = arith.constant 2.000000e+00 : f32
      %66 = vector.broadcast %cst_28 : f32 to vector<8x8xf32>
      %67 = arith.mulf %66, %61 : vector<8x8xf32>
      %68 = arith.subf %65, %67 : vector<8x8xf32>
      %cst_29 = arith.constant 0.000000e+00 : f32
      %69 = vector.broadcast %cst_29 : f32 to vector<8x8xf32>
      %70 = arith.maximumf %68, %69 : vector<8x8xf32>
      %c0_30 = arith.constant 0 : index
      %c0_31 = arith.constant 0 : index
      %71 = vector.load %arg8[%c0_30, %c0_31] : memref<1x1xf32, #tpu.memory_space<vmem>>, vector<1x1xf32>
      %cst_32 = arith.constant 2.500000e-01 : f32
      %72 = vector.broadcast %cst_32 : f32 to vector<1x1xf32>
      %73 = arith.mulf %19, %72 : vector<1x1xf32>
      %74 = vector.broadcast %73 : vector<1x1xf32> to vector<8x8xf32>
      %75 = arith.mulf %70, %74 : vector<8x8xf32>
      %76 = math.exp %75 : vector<8x8xf32>
      %77 = arith.mulf %76, %76 : vector<8x8xf32>
      %78 = arith.addf %76, %77 : vector<8x8xf32>
      %79 = arith.mulf %77, %77 : vector<8x8xf32>
      %80 = arith.addf %78, %79 : vector<8x8xf32>
      %81 = arith.mulf %79, %79 : vector<8x8xf32>
      %82 = arith.addf %80, %81 : vector<8x8xf32>
      %83 = arith.mulf %81, %81 : vector<8x8xf32>
      %84 = arith.addf %82, %83 : vector<8x8xf32>
      %85 = vector.shape_cast %84 : vector<8x8xf32> to vector<1x8x8xf32>
      %cst_33 = arith.constant dense<0.000000e+00> : vector<1xf32>
      %86 = vector.multi_reduction <add>, %85, %cst_33 [1, 2] : vector<1x8x8xf32> to vector<1xf32>
      %87 = vector.shape_cast %86 : vector<1xf32> to vector<1x1x1xf32>
      %88 = vector.extract %87[0, 0, 0] : f32 from vector<1x1x1xf32>
      %89 = vector.broadcast %88 : f32 to vector<1x1xf32>
      %90 = arith.addf %71, %89 : vector<1x1xf32>
      %c0_34 = arith.constant 0 : index
      %c0_35 = arith.constant 0 : index
      %91 = vector.load %arg8[%c0_34, %c0_35] : memref<1x1xf32, #tpu.memory_space<vmem>>, vector<1x1xf32>
      tpu.vector_store %arg8[%c0_34, %c0_35], %90 {strides = array<i32>} : memref<1x1xf32, #tpu.memory_space<vmem>>, vector<1x1xf32>,
    } else {
    }
    %c1_i32_2 = arith.constant 1 : i32
    %6 = arith.cmpi sge, %arg0, %c1_i32_2 : i32
    %7 = arith.extui %6 : i1 to i32
    %c0_i32_3 = arith.constant 0 : i32
    %8 = arith.cmpi ne, %7, %c0_i32_3 : i32
    scf.if %8 {
      %c1_i32_6 = arith.constant 1 : i32
      %12 = arith.subi %arg0, %c1_i32_6 : i32
      %c8_i32 = arith.constant 8 : i32
      %13 = arith.muli %12, %c8_i32 : i32
      %14 = tpu.assume_multiple %13, 8 : i32
      %15 = arith.index_cast %14 : i32 to index
      %c0 = arith.constant 0 : index
      %16 = vector.load %arg2[%15, %c0] : memref<8x32xf32, #tpu.memory_space<vmem>>, vector<8x32xf32>
      %17 = arith.mulf %16, %16 : vector<8x32xf32>
      %cst = arith.constant dense<0.000000e+00> : vector<8xf32>
      %18 = vector.multi_reduction <add>, %17, %cst [1] : vector<8x32xf32> to vector<8xf32>
      %19 = vector.shape_cast %18 : vector<8xf32> to vector<8x1xf32>
      %c0_7 = arith.constant 0 : index
      %c0_8 = arith.constant 0 : index
      %20 = vector.load %arg4[%c0_7, %c0_8] : memref<1x1xf32, #tpu.memory_space<vmem>>, vector<1x1xf32>
      %c0_9 = arith.constant 0 : index
      %c0_10 = arith.constant 0 : index
      %21 = vector.load %arg2[%c0_9, %c0_10] : memref<8x32xf32, #tpu.memory_space<vmem>>, vector<8x32xf32>
      %cst_11 = arith.constant dense<0.000000e+00> : vector<8x8xf32>
      %22 = tpu.matmul %16, %21, %cst_11 {dimension_numbers = #tpu.dot_dimension_numbers<[1], [1], [0], [0], [0, 0, 1, 0], [], []>} : vector<8x32xf32>, vector<8x32xf32>, vector<8x8xf32> -> vector<8x8xf32>
      %c0_12 = arith.constant 0 : index
      %c0_13 = arith.constant 0 : index
      %23 = vector.load %arg6[%c0_12, %c0_13] : memref<1x8xf32, #tpu.memory_space<vmem>>, vector<1x8xf32>
      %24 = vector.broadcast %19 : vector<8x1xf32> to vector<8x8xf32>
      %25 = vector.broadcast %23 : vector<1x8xf32> to vector<8x8xf32>
      %26 = arith.addf %24, %25 : vector<8x8xf32>
      %cst_14 = arith.constant 2.000000e+00 : f32
      %27 = vector.broadcast %cst_14 : f32 to vector<8x8xf32>
      %28 = arith.mulf %27, %22 : vector<8x8xf32>
      %29 = arith.subf %26, %28 : vector<8x8xf32>
      %cst_15 = arith.constant 0.000000e+00 : f32
      %30 = vector.broadcast %cst_15 : f32 to vector<8x8xf32>
      %31 = arith.maximumf %29, %30 : vector<8x8xf32>
      %32 = tpu.iota {dimensions = array<i32: 0>} : vector<8x8xi32>
      %c8_i32_16 = arith.constant 8 : i32
      %33 = arith.muli %12, %c8_i32_16 : i32
      %34 = vector.broadcast %33 : i32 to vector<8x8xi32>
      %35 = arith.addi %32, %34 : vector<8x8xi32>
      %36 = tpu.iota {dimensions = array<i32: 1>} : vector<8x8xi32>
      %37 = arith.cmpi eq, %35, %36 : vector<8x8xi32>
      %cst_17 = arith.constant 0.000000e+00 : f32
      %38 = vector.broadcast %cst_17 : f32 to vector<8x8xf32>
      %39 = arith.select %37, %38, %31 : vector<8x8xi1>, vector<8x8xf32>
      %c0_18 = arith.constant 0 : index
      %c0_19 = arith.constant 0 : index
      %40 = vector.load %arg9[%c0_18, %c0_19] : memref<1x1xf32, #tpu.memory_space<vmem>>, vector<1x1xf32>
      %cst_20 = arith.constant 2.500000e-01 : f32
      %41 = vector.broadcast %cst_20 : f32 to vector<1x1xf32>
      %42 = arith.mulf %20, %41 : vector<1x1xf32>
      %43 = vector.broadcast %42 : vector<1x1xf32> to vector<8x8xf32>
      %44 = arith.mulf %39, %43 : vector<8x8xf32>
      %45 = math.exp %44 : vector<8x8xf32>
      %46 = arith.mulf %45, %45 : vector<8x8xf32>
      %47 = arith.addf %45, %46 : vector<8x8xf32>
      %48 = arith.mulf %46, %46 : vector<8x8xf32>
      %49 = arith.addf %47, %48 : vector<8x8xf32>
      %50 = arith.mulf %48, %48 : vector<8x8xf32>
      %51 = arith.addf %49, %50 : vector<8x8xf32>
      %52 = arith.mulf %50, %50 : vector<8x8xf32>
      %53 = arith.addf %51, %52 : vector<8x8xf32>
      %54 = vector.shape_cast %53 : vector<8x8xf32> to vector<1x8x8xf32>
      %cst_21 = arith.constant dense<0.000000e+00> : vector<1xf32>
      %55 = vector.multi_reduction <add>, %54, %cst_21 [1, 2] : vector<1x8x8xf32> to vector<1xf32>
      %56 = vector.shape_cast %55 : vector<1xf32> to vector<1x1x1xf32>
      %57 = vector.extract %56[0, 0, 0] : f32 from vector<1x1x1xf32>
      %58 = vector.broadcast %57 : f32 to vector<1x1xf32>
      %59 = arith.addf %40, %58 : vector<1x1xf32>
      %c0_22 = arith.constant 0 : index
      %c0_23 = arith.constant 0 : index
      %60 = vector.load %arg9[%c0_22, %c0_23] : memref<1x1xf32, #tpu.memory_space<vmem>>, vector<1x1xf32>
      tpu.vector_store %arg9[%c0_22, %c0_23], %59 {strides = array<i32>} : memref<1x1xf32, #tpu.memory_space<vmem>>, vector<1x1xf32>,
    } else {
    }
    %c1_i32_4 = arith.constant 1 : i32
    %9 = arith.cmpi eq, %arg0, %c1_i32_4 : i32
    %10 = arith.extui %9 : i1 to i32
    %c0_i32_5 = arith.constant 0 : i32
    %11 = arith.cmpi ne, %10, %c0_i32_5 : i32
    scf.if %11 {
      %c0 = arith.constant 0 : index
      %c0_6 = arith.constant 0 : index
      %12 = vector.load %arg7[%c0, %c0_6] : memref<1x1xf32, #tpu.memory_space<vmem>>, vector<1x1xf32>
      %cst = arith.constant 1.562500e-02 : f32
      %13 = vector.broadcast %cst : f32 to vector<1x1xf32>
      %14 = arith.mulf %12, %13 : vector<1x1xf32>
      %c0_7 = arith.constant 0 : index
      %c0_8 = arith.constant 0 : index
      %15 = vector.load %arg8[%c0_7, %c0_8] : memref<1x1xf32, #tpu.memory_space<vmem>>, vector<1x1xf32>
      %cst_9 = arith.constant 2.000000e+00 : f32
      %16 = vector.broadcast %cst_9 : f32 to vector<1x1xf32>
      %17 = arith.mulf %16, %15 : vector<1x1xf32>
      %cst_10 = arith.constant 1.562500e-02 : f32
      %18 = vector.broadcast %cst_10 : f32 to vector<1x1xf32>
      %19 = arith.mulf %17, %18 : vector<1x1xf32>
      %20 = arith.subf %14, %19 : vector<1x1xf32>
      %c0_11 = arith.constant 0 : index
      %c0_12 = arith.constant 0 : index
      %21 = vector.load %arg9[%c0_11, %c0_12] : memref<1x1xf32, #tpu.memory_space<vmem>>, vector<1x1xf32>
      %cst_13 = arith.constant 1.562500e-02 : f32
      %22 = vector.broadcast %cst_13 : f32 to vector<1x1xf32>
      %23 = arith.mulf %21, %22 : vector<1x1xf32>
      %24 = arith.addf %20, %23 : vector<1x1xf32>
      %c0_14 = arith.constant 0 : index
      %c0_15 = arith.constant 0 : index
      %25 = vector.load %arg3[%c0_14, %c0_15] : memref<1x1xf32, #tpu.memory_space<vmem>>, vector<1x1xf32>
      tpu.vector_store %arg3[%c0_14, %c0_15], %24 {strides = array<i32>} : memref<1x1xf32, #tpu.memory_space<vmem>>, vector<1x1xf32>,
    } else {
    }
    return
  }
  func.func @transform_0(%arg0: i32) -> (i32, i32) {
    %c0_i32 = arith.constant 0 : i32
    %c0_i32_0 = arith.constant 0 : i32
    %c0_i32_1 = arith.constant 0 : i32
    return %c0_i32, %c0_i32_0 : i32, i32
  }
  func.func @transform_1(%arg0: i32) -> (i32, i32) {
    %c0_i32 = arith.constant 0 : i32
    %c0_i32_0 = arith.constant 0 : i32
    %c0_i32_1 = arith.constant 0 : i32
    return %c0_i32, %c0_i32_0 : i32, i32
  }
  func.func @transform_2(%arg0: i32) -> (i32, i32) {
    %c0_i32 = arith.constant 0 : i32
    %c0_i32_0 = arith.constant 0 : i32
    %c0_i32_1 = arith.constant 0 : i32
    return %c0_i32, %c0_i32_0 : i32, i32
  }
}

</mosaic_0001>

<bundles_post_ra>
// kernel: tpu_custom_call.1
= control target key start
LH: loop header
LB: loop body
LE: loop exit
PB: predicated region body
PF: predicated region fallthrough
CT: control target
= control target key end

     0   :  { %7 = vsyncpa [#allocation9], 0  ;;  %s1079_s0 = inlined_call_operand.hbm [shape: f32[8,32], index: 0, kind: input, shape index: {}]   ;;  %s1080_s1 = inlined_call_operand.hbm [shape: f32[8,32], index: 1, kind: input, shape index: {}]   ;;  %s1081_s2 = inlined_call_operand.hbm [shape: f32[1,1], index: 2, kind: output, shape index: {}]  }
   0x1   :  { %8 = vsyncpa [#allocation12], 0 }
   0x2   :  { %9 = vsyncpa [#allocation10], 0  ;;  %s994_s9 = smov 0  }
   0x3 LB: > { %s1000_s10 = sadd.s32 4294967295, %s967_s9   ;;  %p761_p0 = scmp.ge.s32.totalorder %s967_s9, 1  ;;  %s967_s9 = sphi %s994_s9, %s15_s9  }
   0x4   : > { %p83_p1 = scmp.lt.s32.totalorder %s967_s9, 3  ;;  %p1082_p3 = scmp.eq.s32.totalorder %s1000_s10, 0 }
   0x5   : > { %s969_s12 = smov [#allocation8]   ;;  %s970_s14 = smov [#allocation11]  }
   0x6   : > { %p1006_p4 = pnand %p761_p0, %p83_p1  ;;  %s96_s13 = sshll.u32 %s969_s12, 4  ;;  %s97_s13 = int_to_ptr.vmem [resolvable:$true] %s96_s13 }
   0x7   : > { %s107_s15 = sshll.u32 %s970_s14, 4  ;;  %s884_s17 = scalar_lea.vmem %s97_s13, 128  ;;  %s108_s15 = int_to_ptr.vmem [resolvable:$true] %s107_s15 }
   0x8   : > { %s1084_s11 = scalar_select %p1006_p4, 1, 0 }
   0x9   : > { %p832_p5 = pneg %p1006_p4  ;;  %p885_p8 = scmp.ne.s32.totalorder %s97_s13, %s884_s17 }
   0xa   : > { %p892_p11 = scmp.lt.s32.totalorder %s97_s13, %s97_s13  ;;  %p893_p12 = scmp.lt.s32.totalorder %s884_s17, %s884_s17 }
   0xb   : > { %p1014_p6 = pnand %p1082_p3, %p832_p5 }
   0xc   : > { %p894_p13 = por %p893_p12, %p892_p11 }
   0xd   : > { %p875_p7 = pneg %p1014_p6 }
   0xf   : > { %p887_p9 = pnand %p885_p8, %p875_p7 }
  0x11   : > { %p888_p10 = pneg %p887_p9 }
  0x13   : > { %p895_p0 = pnand %p894_p13, %p888_p10 }
  0x15   : > { %898 = shalt.err (!%p895_p0)
}
  0x16   : > { %835 = dma.hbm_to_vmem [thread:$0]  (!%p1014_p6), %s1079_s0, 128, %s97_s13, [#allocation9]  }
  0x17   : > { %s910_s20 = scalar_lea.vmem %s108_s15, 128  ;;  %p918_p8 = scmp.lt.s32.totalorder %s108_s15, %s108_s15 }
  0x18   : > { %p911_p1 = scmp.ne.s32.totalorder %s108_s15, %s910_s20  ;;  %p919_p9 = scmp.lt.s32.totalorder %s910_s20, %s910_s20 }
  0x1a   : > { %p913_p5 = pnand %p911_p1, %p875_p7  ;;  %p920_p3 = por %p919_p9, %p918_p8 }
  0x1c   : > { %p914_p2 = pneg %p913_p5 }
  0x1e   : > { %p921_p4 = pnand %p920_p3, %p914_p2 }
  0x20   : > { %924 = shalt.err (!%p921_p4)
}
  0x21   : > { %838 = dma.hbm_to_vmem [thread:$0]  (!%p1014_p6), %s1080_s1, 128, %s108_s15, [#allocation12]  }
  0x22   : > { %p1086_p10 = scmp.ne.s32.totalorder %s1084_s11, 0 }
  0x23   : > { %p1087_p11 = scmp.eq.s32.totalorder (!%p1086_p10), %s1000_s10, 0 }
  0x24   : > { %120 = sbr.rel (%p1086_p10) target bundleno = 1354 (0x54a), region = 28 }
  0x29   : > { %954 = dma.done.wait (%p1087_p11), [#allocation9], 128   ;;  %p1088_p7 = pmov %p1087_p11 }
  0x2b   : > { %956 = vsyncadd (%p1088_p7), [#allocation9], 4294967168  ;;  %p1089_p12 = pmov %p1088_p7 }
  0x2c   : > { %p1090_p2 = pmov %p1088_p7 }
  0x2d   : > { %958 = dma.done.wait (%p1089_p12), [#allocation12], 128  }
  0x2e   : > { %960 = vsyncadd (%p1090_p2), [#allocation12], 4294967168  ;;  %p1091_p3 = scmp.ne.s32.totalorder %s1000_s10, 0 }
  0x30   : > { %139 = sbr.rel (%p1091_p3) target bundleno = 428 (0x1ac), region = 40 }
  0x35   : > { %v140_v0 = vld [vmem:[#allocation8] sm:$0xff]  ;;  %vm143_vm0 = vcmask 261120   ;;  %v141_v1 = vld [vmem:[#allocation11] sm:$0xff]  ;;  %vm259_vm1 = vcmask 253952   ;;  %vm218_vm2 = vcmask 7168   ;;  %vm277_vm3 = vcmask 0  }
  0x36   : > { %v142_v2 = vmul.f32 %v140_v0, %v140_v0  ;;  %v242_v3 = vsel %vm143_vm0, %v140_v0, 0.0  ;;  %v147_v4 = vmul.f32 %v141_v1, %v141_v1  ;;  %v249_v5 = vsel %vm143_vm0, %v141_v1, 0.0 }
  0x37   : > { %v243_v6 = vrot.slane %v242_v3, 4  ;;  %v250_v7 = vrot.slane %v249_v5, 4  ;;  %v971_v27 = vmov 0.0   ;;  %vm183_vm4 = vcmask 57344  }
  0x38   : > { %v144_v8 = vsel %vm143_vm0, %v142_v2, 0.0  ;;  %v148_v11 = vsel %vm143_vm0, %v147_v4, 0.0  ;;  %279 = vst.msk [vmem:[#allocation5] sm:$0x1] %vm277_vm3, %v971_v27  ;;  %280 = vst.msk [vmem:[#allocation6] sm:$0x1] %vm277_vm3, %v971_v27 }
  0x39   : > { %v244_v9 = vadd.f32 %v243_v6, %v242_v3  ;;  %145 = vadd.xlane.f32.xlu0 %v144_v8  ;;  %v251_v10 = vadd.f32 %v250_v7, %v249_v5  ;;  %281 = vst.msk [vmem:[#allocation7] sm:$0x1] %vm277_vm3, %v971_v27 }
  0x3b   : > { %v245_v12 = vrot.slane %v244_v9, 2  ;;  %v252_v13 = vrot.slane %v251_v10, 2 }
  0x3d   : > { %v246_v14 = vadd.f32 %v245_v12, %v244_v9  ;;  %149 = vadd.xlane.f32.xlu0 %v148_v11  ;;  %v253_v15 = vadd.f32 %v252_v13, %v251_v10 }
  0x3f   : > { %v247_v16 = vrot.slane %v246_v14, 1  ;;  %v254_v17 = vrot.slane %v253_v15, 1 }
  0x41   : > { %v248_v18 = vadd.f32 %v247_v16, %v246_v14  ;;  %v255_v19 = vadd.f32 %v254_v17, %v253_v15 }
  0x43   : > { %v256_v20 = vadd.f32 %v255_v19, %v248_v18 }
  0x45   : > { %v258_v21 = vmul.f32 %v256_v20, %v256_v20 }
  0x47   : > { %v260_v22 = vsel %vm259_vm1, %v258_v21, 0.0 }
  0x48   : > { %261 = vadd.xlane.f32.xlu0 %v260_v22 }
  0xc2   : > { %v146_v23 = vpop.xlane.xlu0 %145 }
  0xc3   : > { %v219_v24 = vsel %vm218_vm2, %v146_v23, 0.0 }
  0xc4   : > { %220 = vadd.xlane.f32.xlu1 %v219_v24 }
  0xc6   : > { %v150_v25 = vpop.xlane.xlu0 %149 }
  0xc7   : > { %185 = vxpose.xlu0.b32.start.end [1/1] (short) (narrow) %v150_v25, 8  ;;  %v230_v26 = vsel %vm218_vm2, %v150_v25, 0.0 }
  0xc8   : > { %231 = vadd.xlane.f32.xlu1 %v230_v26 }
  0xd1   : > { %v262_v28 = vpop.xlane.xlu0 %261 }
  0xd2   : > { %v263_v30 = vrot.slane %v262_v28, 4 }
  0xd4   : > { %v264_v32 = vadd.f32 %v263_v30, %v262_v28 }
  0xd6   : > { %v265_v35 = vrot.slane %v264_v32, 2 }
  0xd8   : > { %v266_v41 = vadd.f32 %v265_v35, %v264_v32 }
  0xda   : > { %v267_v46 = vrot.slane %v266_v41, 1 }
  0xdc   : > { %v268_v49 = vadd.f32 %v267_v46, %v266_v41 }
  0xfb   : > { %151 = vxpose.xlu1.b32.start.end [1/1] (short) (narrow) %v146_v23, 8 }
 0x143   : > { %v201_v29 = vpop.trf.xlu0 }
 0x144   : > { %217 = vst.msk [vmem:[#allocation4] sm:$0x1] %vm183_vm4, %v201_v29 }
 0x14d   : > { %v221_v31 = vpop.xlane.xlu1 %220 }
 0x14e   : > { %v222_v33 = vrot.slane %v221_v31, 4 }
 0x150   : > { %v223_v34 = vadd.f32 %v222_v33, %v221_v31 }
 0x151   : > { %v232_v36 = vpop.xlane.xlu1 %231 }
 0x152   : > { %v224_v37 = vrot.slane %v223_v34, 2  ;;  %v233_v38 = vrot.slane %v232_v36, 4 }
 0x154   : > { %v234_v39 = vadd.f32 %v233_v38, %v232_v36  ;;  %v225_v40 = vadd.f32 %v224_v37, %v223_v34 }
 0x156   : > { %v235_v42 = vrot.slane %v234_v39, 2  ;;  %v226_v43 = vrot.slane %v225_v40, 1 }
 0x158   : > { %v227_v44 = vadd.f32 %v226_v43, %v225_v40  ;;  %v236_v45 = vadd.f32 %v235_v42, %v234_v39 }
 0x15a   : > { %808 = vpush %v227_v44  ;;  %v237_v47 = vrot.slane %v236_v45, 1 }
 0x15c   : > { %v238_v48 = vadd.f32 %v237_v47, %v236_v45 }
 0x15e   : > { %810 = vpush %v238_v48 }
 0x15f   : > { %812 = vpush %v268_v49 }
 0x177   : > { %v167_v50 = vpop.trf.xlu1 }
 0x178   : > { %184 = vst.msk [vmem:[#allocation3] sm:$0x1] %vm183_vm4, %v167_v50 }
 0x18b   : > { %s809_s23 = spop %808 }
 0x18c   : > { %v229_v51 = vstv %s809_s23 }
 0x18f   : > { %s811_s24 = spop %810 }
 0x190   : > { %v240_v52 = vstv %s811_s24  ;;  %s813_s25 = spop %812 }
 0x191   : > { %v241_v53 = vadd.f32 %v240_v52, %v229_v51  ;;  %v270_v54 = vstv %s813_s25 }
 0x192   : > { %v271_v56 = vmul.f32 2.0, %v270_v54 }
 0x193   : > { %v257_v55 = vmul.f32 32.0, %v241_v53 }
 0x195   : > { %v272_v57 = vsub.f32 %v257_v55, %v271_v56 }
 0x197   : > { %v273_v58 = vmax.f32 %v272_v57, 0.0 }
 0x199   : > { %v274_v59 = vmul.f32 0.004166667, %v273_v58 }
 0x19b   : > { %863 = vrcp.f32 %v274_v59 }
 0x1a8   : > { %v864_v60 = vpop.eup %863 }
 0x1a9   : > { %v276_v61 = vsub.f32 0.0, %v864_v60 }
 0x1ab   : > { %278 = vst.msk [vmem:[#allocation2] sm:$0x1] %vm277_vm3, %v276_v61 }
 0x1ac PF: > { %p768_p4 = scmp.ge.s32.totalorder %s1000_s10, 1 }
 0x1ad   : > { %s769_s26 = sshll.u32 (!%p768_p4), %s1000_s10, 3 }
 0x1ae   : > { %285 = sbr.rel (%p768_p4) target bundleno = 877 (0x36d), region = 44  ;;  %s287_s27 = scalar_lea.vmem (!%p768_p4), [#allocation8], %s769_s26 }
 0x1b3   : > { %vm290_vm5 = vcmask 261120   ;;  %v295_v62 = vld [vmem:[#allocation8] sm:$0xff]  ;;  %v428_v63 = vld [vmem:[#allocation11] sm:$0xff]  ;;  %v972_v0 = vmov 0.0   ;;  %vm973_vm6 = vmmov 0   ;;  %v974_v3 = vmov 0  }
 0x1b4   : > { %793 = vmatprep.subr.mxu0 %v972_v0  ;;  %798 = vmatprep.subr.mxu1 %v972_v0  ;;  %v288_v1 = vld [vmem:[%s287_s27] sm:$0xff]  ;;  %v383_v5 = vlaneseq  ;;  %v385_v14 = vstv %s769_s26  ;;  %vm413_vm8 = vcmask 64512   ;;  %vm426_vm9 = vcmask 0  }
 0x1b5   : > { %794 = vmatpush3.xpose.msk.msra.mxu0 %vm290_vm5, %v295_v62  ;;  %799 = vmatpush3.xpose.msk.msra.mxu1 %vm290_vm5, %v428_v63  ;;  %v289_v2 = vmul.f32 %v288_v1, %v288_v1  ;;  %v294_v7 = vld [vmem:[#allocation2] sm:$0x1]  ;;  %v772_v11 = vld [vmem:[#allocation3] ss:$0 sm:$0xff]  ;;  %v775_v12 = vld [vmem:[#allocation4] ss:$0 sm:$0xff] }
 0x1b6   : > { %795 = vmatprep.mubr.msk.f32.mxu0 %vm973_vm6, %v972_v0  ;;  %800 = vmatprep.mubr.msk.f32.mxu1 %vm973_vm6, %v972_v0  ;;  %v384_v6 = vshrl.u32 %v383_v5, 7  ;;  %v392_v8 = vmul.f32 0.25, %v294_v7  ;;  %v388_v20 = vand.u32 127, %v383_v5  ;;  %v391_v5 = vld [vmem:[#allocation5] sm:$0x1] }
 0x1b7   : > { %865 = vset.pattern.permute.xlu0 %v974_v3  ;;  %v291_v4 = vsel %vm290_vm5, %v289_v2, 0.0 }
 0x1b8   : > { %796 = vmatmul.mubr.msk.f32.vlgmr.msra.gmra.mxu0 %vm290_vm5, %v288_v1  ;;  %801 = vmatmul.mubr.msk.f32.vlgmr.msra.gmra.mxu1 %vm290_vm5, %v288_v1  ;;  %v396_v9 = vsub.s32 0, %v384_v6  ;;  %v386_v19 = vadd.s32 %v385_v14, %v384_v6 }
 0x1b9   : > { %292 = vadd.xlane.f32.xlu0 %v291_v4 }
 0x1ba   : > { %v397_v10 = vrot.slane %v392_v8, %v396_v9  ;;  %vm389_vm7 = vcmp.eq.s32.totalorder %v386_v19, %v388_v20  ;;  %v513_v8 = vld [vmem:[#allocation6] sm:$0x1] }
 0x1cf   : > { %399 = vperm.xlu0 %865, %v397_v10  }
 0x242   : > { %v293_v13 = vpop.xlane.xlu0 %292 }
 0x243   : > { %v379_v15 = vadd.f32 %v772_v11, %v293_v13  ;;  %v509_v16 = vadd.f32 %v775_v12, %v293_v13 }
 0x24a   : > { %v400_v27 = vpop.permute.xlu0 %399 }
 0x278   : > { %v368_v17 = vpop.f32.mrf.mxu0  ;;  %v498_v18 = vpop.f32.mrf.mxu1 }
 0x279   : > { %v380_v21 = vmul.f32 2.0, %v368_v17  ;;  %v510_v22 = vmul.f32 2.0, %v498_v18 }
 0x27a   : > { %v797_v23 = vpop.f32.mrf.mxu0  ;;  %v802_v24 = vpop.f32.mrf.mxu1 }
 0x27b   : > { %v381_v25 = vsub.f32 %v379_v15, %v380_v21  ;;  %v511_v26 = vsub.f32 %v509_v16, %v510_v22 }
 0x27d   : > { %v382_v28 = vmax.f32 %v381_v25, 0.0  ;;  %v512_v29 = vmax.f32 %v511_v26, 0.0 }
 0x27f   : > { %v390_v30 = vsel %vm389_vm7, 0.0, %v382_v28  ;;  %v514_v31 = vmul.f32 %v512_v29, %v400_v27 }
 0x280   : > { %v402_v32 = vmul.f32 %v400_v27, %v390_v30 }
 0x281   : > { %v515_v33 = vmul.f32 1.442695, %v514_v31 }
 0x282   : > { %v403_v34 = vmul.f32 1.442695, %v402_v32 }
 0x283   : > { %866 = vpow2.f32 %v515_v33 }
 0x284   : > { %868 = vpow2.f32 %v403_v34 }
 0x290   : > { %v867_v35 = vpop.eup %866 }
 0x291   : > { %v869_v36 = vpop.eup %868  ;;  %v517_v37 = vmul.f32 %v867_v35, %v867_v35 }
 0x292   : > { %v405_v38 = vmul.f32 %v869_v36, %v869_v36 }
 0x293   : > { %v518_v39 = vadd.f32 %v867_v35, %v517_v37  ;;  %v519_v40 = vmul.f32 %v517_v37, %v517_v37 }
 0x294   : > { %v406_v41 = vadd.f32 %v869_v36, %v405_v38  ;;  %v407_v42 = vmul.f32 %v405_v38, %v405_v38 }
 0x295   : > { %v520_v43 = vadd.f32 %v519_v40, %v518_v39  ;;  %v521_v44 = vmul.f32 %v519_v40, %v519_v40 }
 0x296   : > { %v408_v45 = vadd.f32 %v407_v42, %v406_v41  ;;  %v409_v46 = vmul.f32 %v407_v42, %v407_v42 }
 0x297   : > { %v522_v49 = vadd.f32 %v521_v44, %v520_v43  ;;  %v523_v50 = vmul.f32 %v521_v44, %v521_v44 }
 0x298   : > { %v410_v47 = vadd.f32 %v409_v46, %v408_v45  ;;  %v411_v48 = vmul.f32 %v409_v46, %v409_v46 }
 0x299   : > { %v524_v53 = vadd.f32 %v523_v50, %v522_v49 }
 0x29a   : > { %v412_v51 = vadd.f32 %v411_v48, %v410_v47 }
 0x29b   : > { %v525_v54 = vsel %vm413_vm8, %v524_v53, 0.0 }
 0x29c   : > { %v414_v52 = vsel %vm413_vm8, %v412_v51, 0.0 }
 0x29d   : > { %415 = vadd.xlane.f32.xlu1 %v414_v52 }
 0x2a1   : > { %526 = vadd.xlane.f32.xlu1 %v525_v54 }
 0x326   : > { %v416_v55 = vpop.xlane.xlu1 %415 }
 0x327   : > { %v417_v56 = vrot.slane %v416_v55, 4 }
 0x329   : > { %v418_v57 = vadd.f32 %v417_v56, %v416_v55 }
 0x32a   : > { %v527_v58 = vpop.xlane.xlu1 %526 }
 0x32b   : > { %v419_v59 = vrot.slane %v418_v57, 2  ;;  %v528_v60 = vrot.slane %v527_v58, 4 }
 0x32d   : > { %v529_v61 = vadd.f32 %v528_v60, %v527_v58  ;;  %v420_v62 = vadd.f32 %v419_v59, %v418_v57 }
 0x32f   : > { %v530_v63 = vrot.slane %v529_v61, 2  ;;  %v421_v0 = vrot.slane %v420_v62, 1 }
 0x331   : > { %v531_v1 = vadd.f32 %v530_v63, %v529_v61  ;;  %v422_v2 = vadd.f32 %v421_v0, %v420_v62 }
 0x333   : > { %814 = vpush %v422_v2  ;;  %v532_v3 = vrot.slane %v531_v1, 1 }
 0x335   : > { %v533_v4 = vadd.f32 %v532_v3, %v531_v1 }
 0x337   : > { %816 = vpush %v533_v4 }
 0x364   : > { %s815_s28 = spop %814 }
 0x365   : > { %v424_v6 = vstv %s815_s28 }
 0x366   : > { %v425_v7 = vadd.f32 %v424_v6, %v391_v5 }
 0x368   : > { %427 = vst.msk [vmem:[#allocation5] sm:$0x1] %vm426_vm9, %v425_v7  ;;  %s817_s29 = spop %816 }
 0x369   : > { %v535_v9 = vstv %s817_s29 }
 0x36a   : > { %v536_v10 = vadd.f32 %v535_v9, %v513_v8 }
 0x36c   : > { %537 = vst.msk [vmem:[#allocation6] sm:$0x1] %vm426_vm9, %v536_v10 }
 0x36d PF: > { %p776_p6 = scmp.lt.s32.totalorder %s1000_s10, 1 }
 0x36e   : > { %s777_s30 = sadd.s32 (!%p776_p6), 4294967295, %s1000_s10 }
 0x36f   : > { %541 = sbr.rel (%p776_p6) target bundleno = 1322 (0x52a), region = 48  ;;  %s778_s3 = sshll.u32 (!%p776_p6), %s777_s30, 3 }
 0x370   : > { %s544_s4 = scalar_lea.vmem (!%p776_p6), [#allocation11], %s778_s3 }
 0x374   : > { %vm547_vm10 = vcmask 261120   ;;  %v552_v11 = vld [vmem:[#allocation11] sm:$0xff]  ;;  %v975_v12 = vmov 0.0   ;;  %vm976_vm11 = vmmov 0   ;;  %v977_v13 = vmov 0   ;;  %v545_v14 = vld [vmem:[%s544_s4] sm:$0xff] }
 0x375   : > { %803 = vmatprep.subr.mxu0 %v975_v12  ;;  %805 = vmatprep.mubr.msk.f32.mxu0 %vm976_vm11, %v975_v12  ;;  %v546_v15 = vmul.f32 %v545_v14, %v545_v14  ;;  %v640_v17 = vlaneseq  ;;  %v551_v19 = vld [vmem:[#allocation2] sm:$0x1]  ;;  %v781_v23 = vld [vmem:[#allocation4] ss:$0 sm:$0xff]  ;;  %v642_v25 = vstv %s778_s3  ;;  %vm670_vm13 = vcmask 64512  }
 0x376   : > { %804 = vmatpush3.xpose.msk.msra.mxu0 %vm547_vm10, %v552_v11  ;;  %870 = vset.pattern.permute.xlu0 %v977_v13  ;;  %v649_v20 = vmul.f32 0.25, %v551_v19  ;;  %v648_v55 = vld [vmem:[#allocation7] sm:$0x1]  ;;  %vm683_vm14 = vcmask 0  }
 0x377   : > { %v548_v16 = vsel %vm547_vm10, %v546_v15, 0.0  ;;  %v641_v18 = vshrl.u32 %v640_v17, 7  ;;  %v645_v29 = vand.u32 127, %v640_v17 }
 0x378   : > { %549 = vadd.xlane.f32.xlu0 %v548_v16 }
 0x379   : > { %806 = vmatmul.mubr.msk.f32.vlgmr.msra.gmra.mxu0 %vm547_vm10, %v545_v14  ;;  %v653_v21 = vsub.s32 0, %v641_v18  ;;  %v643_v28 = vadd.s32 %v642_v25, %v641_v18 }
 0x37b   : > { %v654_v22 = vrot.slane %v649_v20, %v653_v21  ;;  %vm646_vm12 = vcmp.eq.s32.totalorder %v643_v28, %v645_v29 }
 0x38e   : > { %656 = vperm.xlu0 %870, %v654_v22  }
 0x401   : > { %v550_v24 = vpop.xlane.xlu0 %549 }
 0x402   : > { %v636_v26 = vadd.f32 %v781_v23, %v550_v24 }
 0x409   : > { %v657_v34 = vpop.permute.xlu0 %656 }
 0x439   : > { %v625_v27 = vpop.f32.mrf.mxu0 }
 0x43a   : > { %v637_v30 = vmul.f32 2.0, %v625_v27 }
 0x43b   : > { %v807_v31 = vpop.f32.mrf.mxu0 }
 0x43c   : > { %v638_v32 = vsub.f32 %v636_v26, %v637_v30 }
 0x43e   : > { %v639_v33 = vmax.f32 %v638_v32, 0.0 }
 0x440   : > { %v647_v35 = vsel %vm646_vm12, 0.0, %v639_v33 }
 0x441   : > { %v659_v36 = vmul.f32 %v657_v34, %v647_v35 }
 0x443   : > { %v660_v37 = vmul.f32 1.442695, %v659_v36 }
 0x445   : > { %871 = vpow2.f32 %v660_v37 }
 0x452   : > { %v872_v38 = vpop.eup %871 }
 0x453   : > { %v662_v39 = vmul.f32 %v872_v38, %v872_v38 }
 0x455   : > { %v663_v40 = vadd.f32 %v872_v38, %v662_v39  ;;  %v664_v41 = vmul.f32 %v662_v39, %v662_v39 }
 0x457   : > { %v665_v42 = vadd.f32 %v664_v41, %v663_v40  ;;  %v666_v43 = vmul.f32 %v664_v41, %v664_v41 }
 0x459   : > { %v667_v44 = vadd.f32 %v666_v43, %v665_v42  ;;  %v668_v45 = vmul.f32 %v666_v43, %v666_v43 }
 0x45b   : > { %v669_v46 = vadd.f32 %v668_v45, %v667_v44 }
 0x45d   : > { %v671_v47 = vsel %vm670_vm13, %v669_v46, 0.0 }
 0x45e   : > { %672 = vadd.xlane.f32.xlu1 %v671_v47 }
 0x4e7   : > { %v673_v48 = vpop.xlane.xlu1 %672 }
 0x4e8   : > { %v674_v49 = vrot.slane %v673_v48, 4 }
 0x4ea   : > { %v675_v50 = vadd.f32 %v674_v49, %v673_v48 }
 0x4ec   : > { %v676_v51 = vrot.slane %v675_v50, 2 }
 0x4ee   : > { %v677_v52 = vadd.f32 %v676_v51, %v675_v50 }
 0x4f0   : > { %v678_v53 = vrot.slane %v677_v52, 1 }
 0x4f2   : > { %v679_v54 = vadd.f32 %v678_v53, %v677_v52 }
 0x4f4   : > { %818 = vpush %v679_v54 }
 0x525   : > { %s819_s5 = spop %818 }
 0x526   : > { %v681_v56 = vstv %s819_s5 }
 0x527   : > { %v682_v57 = vadd.f32 %v681_v56, %v648_v55 }
 0x529   : > { %684 = vst.msk [vmem:[#allocation7] sm:$0x1] %vm683_vm14, %v682_v57 }
 0x52a PF: > { %p782_p13 = scmp.ne.s32.totalorder %s1000_s10, 1 }
 0x52c   : > { %688 = sbr.rel (%p782_p13) target bundleno = 1339 (0x53b), region = 52 }
 0x531   : > { %v689_v58 = vld [vmem:[#allocation5] sm:$0x1]  ;;  %v691_v59 = vld [vmem:[#allocation6] sm:$0x1]  ;;  %v695_v60 = vld [vmem:[#allocation7] sm:$0x1] }
 0x532   : > { %v690_v61 = vmul.f32 0.015625, %v689_v58  ;;  %v692_v62 = vmul.f32 2.0, %v691_v59  ;;  %v696_v0 = vmul.f32 0.015625, %v695_v60  ;;  %vm698_vm15 = vcmask 0  }
 0x534   : > { %v693_v63 = vmul.f32 0.015625, %v692_v62 }
 0x536   : > { %v694_v1 = vsub.f32 %v690_v61, %v693_v63 }
 0x538   : > { %v697_v2 = vadd.f32 %v696_v0, %v694_v1 }
 0x53a   : > { %699 = vst.msk [vmem:[#allocation13] sm:$0x1] %vm698_vm15, %v697_v2 }
 0x53b PF: > { %p843_p0 = scmp.eq.s32.totalorder %s1000_s10, 1  ;;  %s978_s6 = smov [#allocation13]  }
 0x53c   : > { %s707_s7 = sshll.u32 %s978_s6, 4  ;;  %s708_s7 = int_to_ptr.vmem [resolvable:$true] %s707_s7 }
 0x53d   : > { %s925_s8 = scalar_lea.vmem %s708_s7, 16  ;;  %s931_s11 = scalar_lea.vmem %s708_s7, 32 }
 0x53e   : > { %p926_p1 = scmp.ne.s32.totalorder %s708_s7, %s925_s8  ;;  %p932_p9 = scmp.lt.s32.totalorder %s708_s7, %s708_s7 }
 0x53f   : > { %p933_p10 = scmp.lt.s32.totalorder %s931_s11, %s925_s8 }
 0x540   : > { %p927_p5 = pnand %p926_p1, %p843_p0 }
 0x541   : > { %p934_p11 = por %p933_p10, %p932_p9 }
 0x542   : > { %p928_p8 = pneg %p927_p5 }
 0x544   : > { %p935_p7 = pnand %p934_p11, %p928_p8 }
 0x546   : > { %938 = shalt.err (!%p935_p7)
}
 0x547   : > { %829 = dma.vmem_to_hbm [thread:$0]  (%p843_p0), %s708_s7, 16, %s1081_s2, [#allocation10]  }
 0x548   : > { %962 = dma.done.wait (%p843_p0), [#allocation10], 16  }
 0x549   : > { %964 = vsyncadd (%p843_p0), [#allocation10], 4294967280 }
 0x54a PF: > { %s15_s9 = sadd.s32 1, %s967_s9  }
 0x54b   : > { %p12_p12 = scmp.ge.s32.totalorder %s15_s9, 4  }
 0x54d   :  { %14 = sbr.rel (!%p12_p12) target bundleno = 3 (0x3), region = 79 }
 0x552   :  { %720 = vsyncpa [#allocation9], 1 }
 0x553   :  { %722 = vsyncpa [#allocation9 + $0x1], 1 }
 0x554   :  { %723 = vsyncpa [#allocation12], 1 }
 0x555   :  { %724 = vsyncpa [#allocation10], 1 }
 0x556   :  { %726 = vsyncpa [#allocation10 + $0x1], 1 }

</bundles_post_ra>
